<compile_context>
chip_gen: v5e
topology: v5e:2x2
jax: 0.10.0
libtpu: 0.0.40
codegen_flags: <defaults>
</compile_context>

<pallas_src>
import random

import numpy as np
import jax
import jax.numpy as jnp
from jax.experimental import pallas as pl
from jax.experimental.pallas import tpu as pltpu


# ----------------------------------------------------------------------------
# Severity parameter tables (from the imagecorruptions / ImageNet-C library).
# ----------------------------------------------------------------------------
_GAUSS_NOISE_C   = [0.08, 0.12, 0.18, 0.26, 0.38]
_SHOT_NOISE_C    = [60.0, 25.0, 12.0, 5.0, 3.0]
_IMPULSE_NOISE_C = [0.03, 0.06, 0.09, 0.17, 0.27]
_SPECKLE_NOISE_C = [0.15, 0.20, 0.35, 0.45, 0.60]
_BRIGHTNESS_C    = [0.1, 0.2, 0.3, 0.4, 0.5]
_CONTRAST_C      = [0.4, 0.3, 0.2, 0.1, 0.05]
_SATURATE_C      = [(0.3, 0.0), (0.1, 0.0), (2.0, 0.0), (5.0, 0.1), (20.0, 0.2)]
_GAUSS_BLUR_C    = [1.0, 2.0, 3.0, 4.0, 6.0]
_DEFOCUS_C       = [(3, 0.1), (4, 0.5), (6, 0.5), (8, 0.5), (10, 0.5)]
_MOTION_C        = [(10, 3), (15, 5), (15, 8), (15, 12), (20, 15)]

# Point-wise corruption modes.
_P_GAUSS, _P_SHOT, _P_IMPULSE, _P_SPECKLE, _P_BRIGHT, _P_CONTRAST, _P_SATURATE = range(7)

_DEFOCUS_RANK = 10   # SVD rank kept for the disk kernel (review suggests 5-10)


# ----------------------------------------------------------------------------
# Small tiling helpers.
# ----------------------------------------------------------------------------
def _round_up(x, m):
    return ((x + m - 1) // m) * m


def _lane_dense_2d(total):
    """Pick a lane-dense (rows, lane) factorization of a flat element count."""
    for lane in (512, 256, 128):
        if total % lane == 0:
            return total // lane, lane
    return 1, total


def _pick_row_tile(rows, lane, budget=8 << 20):
    """Largest row tile (divisor of rows, multiple of 8) under a byte budget."""
    if rows * lane * 4 <= budget:
        return rows
    for tr in range(rows, 0, -1):
        if rows % tr == 0 and tr % 8 == 0 and tr * lane * 4 <= budget:
            return tr
    return rows


def _pick_batch_tile(n, per_item_bytes, budget):
    """Largest divisor of n whose block stays under the byte budget."""
    bt = 1
    for d in range(1, n + 1):
        if n % d == 0 and d * per_item_bytes <= budget:
            bt = d
    return bt


# ----------------------------------------------------------------------------
# Point-wise (fully elementwise) corruption kernel — lane-dense 2-D blocks.
# ----------------------------------------------------------------------------
def _make_elementwise_kernel(mode, needs_noise):
    def kernel(*refs):
        if needs_noise:
            p_ref, x_ref, n_ref, o_ref = refs
        else:
            p_ref, x_ref, o_ref = refs
        p = p_ref[...]                    # (1, 1) broadcastable severity scalar
        x = x_ref[...]
        if mode == _P_GAUSS:
            y = x + p * n_ref[...]
        elif mode == _P_SHOT:
            # TODO(synk): library uses exact Poisson(x*c)/c; matched-variance
            # gaussian approximation here (var = x / c).
            y = x + jnp.sqrt(jnp.maximum(x, 0.0) / p) * n_ref[...]
        elif mode == _P_IMPULSE:
            u = n_ref[...]                # uniform [0,1)
            y = jnp.where(u < 0.5 * p, 0.0, jnp.where(u < p, 1.0, x))
        elif mode == _P_SPECKLE:
            y = x + x * (p * n_ref[...])
        elif mode == _P_BRIGHT:
            # TODO(synk): library adds c to the V channel in HSV; plain RGB add here.
            y = x + p
        else:
            y = x
        o_ref[...] = jnp.clip(y, 0.0, 1.0)

    return kernel


def _elementwise_corrupt(x, mode, p0, key):
    shape = x.shape
    total = int(np.prod(shape))
    rows, lane = _lane_dense_2d(total)
    tr = _pick_row_tile(rows, lane)
    x2 = x.reshape(rows, lane)

    needs_noise = mode in (_P_GAUSS, _P_SHOT, _P_IMPULSE, _P_SPECKLE)
    p_arr = jnp.full((1, 1), float(p0), jnp.float32)

    args = [p_arr, x2]
    in_specs = [
        pl.BlockSpec((1, 1), lambda i: (0, 0)),
        pl.BlockSpec((tr, lane), lambda i: (i, 0)),
    ]
    if needs_noise:
        if mode == _P_IMPULSE:
            noise = jax.random.uniform(key, (rows, lane), dtype=jnp.float32)
        else:
            noise = jax.random.normal(key, (rows, lane), dtype=jnp.float32)
        args.append(noise)
        in_specs.append(pl.BlockSpec((tr, lane), lambda i: (i, 0)))

    out = pl.pallas_call(
        _make_elementwise_kernel(mode, needs_noise),
        out_shape=jax.ShapeDtypeStruct((rows, lane), jnp.float32),
        grid=(rows // tr,),
        in_specs=in_specs,
        out_specs=pl.BlockSpec((tr, lane), lambda i: (i, 0)),
        compiler_params=pltpu.CompilerParams(dimension_semantics=("parallel",)),
    )(*args)
    return out.reshape(shape)


# ----------------------------------------------------------------------------
# Channel-aware corruption kernel (contrast, saturate) — (Bt, C, H*W) blocks.
# ----------------------------------------------------------------------------
def _make_channel_kernel(mode):
    def kernel(p_ref, x_ref, o_ref):
        p = p_ref[...]                    # (1, 1)
        x = x_ref[...]                    # (Bt, C, HW)
        if mode == _P_CONTRAST:
            m = jnp.mean(x, axis=2, keepdims=True)         # per-channel spatial mean
            y = (x - m) * p + m
        else:  # _P_SATURATE
            # TODO(synk): library scales the S channel in HSV (and ignores the
            # additive term only approximately here); mix-with-gray in RGB.
            gray = jnp.mean(x, axis=1, keepdims=True)
            y = gray + p * (x - gray)
        o_ref[...] = jnp.clip(y, 0.0, 1.0)

    return kernel


def _channel_corrupt(x, mode, p0):
    n, c, h, w = x.shape
    hw = h * w
    x3 = x.reshape(n, c, hw)
    bt = _pick_batch_tile(n, c * hw * 4, budget=4 << 20)
    p_arr = jnp.full((1, 1), float(p0), jnp.float32)

    out = pl.pallas_call(
        _make_channel_kernel(mode),
        out_shape=jax.ShapeDtypeStruct((n, c, hw), jnp.float32),
        grid=(n // bt,),
        in_specs=[
            pl.BlockSpec((1, 1), lambda i: (0, 0)),
            pl.BlockSpec((bt, c, hw), lambda i: (i, 0, 0)),
        ],
        out_specs=pl.BlockSpec((bt, c, hw), lambda i: (i, 0, 0)),
        compiler_params=pltpu.CompilerParams(dimension_semantics=("parallel",)),
    )(p_arr, x3)
    return out.reshape(n, c, h, w)


# ----------------------------------------------------------------------------
# Blur kernel — separable / low-rank MXU matmuls:  out = sum_r Ah_r @ X @ Bw_r^T.
# The boundary handling (reflect / edge) is folded into the banded operator
# matrices, so no padded copy of the input is ever materialized in HBM.
# ----------------------------------------------------------------------------
def _make_blur_kernel(bt, c, h, w, rank):
    bc = bt * c

    def kernel(ahT_ref, bwT_ref, x_ref, o_ref):
        xw = x_ref[...].reshape(bc * h, w)                 # W along the lane axis
        acc = jnp.zeros((bc, h, w), jnp.float32)
        for r in range(rank):                              # static unroll over rank terms
            zw = jnp.dot(xw, bwT_ref[r], preferred_element_type=jnp.float32)
            zt = jnp.swapaxes(zw.reshape(bc, h, w), 1, 2)  # (bc, W, H)
            zh = jnp.dot(zt.reshape(bc * w, h), ahT_ref[r],
                         preferred_element_type=jnp.float32)
            acc = acc + jnp.swapaxes(zh.reshape(bc, w, h), 1, 2)
        o_ref[...] = jnp.clip(acc, 0.0, 1.0).reshape(bt, c, h, w)

    return kernel


def _conv1d_boundary_matrix(taps, n):
    """(n, n) matrix applying a 1-D correlation with reflect (or edge) boundary."""
    taps = np.asarray(taps, np.float64)
    k = taps.shape[0]
    pad = k // 2
    use_reflect = pad < n                      # matches the previous pad-mode choice
    m = np.zeros((n, n), np.float64)
    for i in range(n):
        for p in range(k):
            j = i + p - pad
            if use_reflect and n > 1:
                period = 2 * n - 2
                j = j % period
                if j >= n:
                    j = period - j
            else:
                j = min(max(j, 0), n - 1)
            m[i, j] += taps[p]
    return m.astype(np.float32)


def _blur_corrupt(x, us, vs, rank):
    """us/vs: per-rank 1-D factors of the 2-D filter (row dir, col dir)."""
    n, c, h, w = x.shape
    klen = len(us[0])
    us = [np.asarray(u, np.float64) for u in us][:rank]
    vs = [np.asarray(v, np.float64) for v in vs][:rank]
    while len(us) < rank:                      # pad to a fixed rank → stable compiles
        us.append(np.zeros(klen))
        vs.append(np.zeros(klen))

    ahT = np.stack([_conv1d_boundary_matrix(u, h).T for u in us])   # (R, H, H)
    bwT = np.stack([_conv1d_boundary_matrix(v, w).T for v in vs])   # (R, W, W)

    bt = _pick_batch_tile(n, c * h * w * 4, budget=2 << 20)
    block_bytes = bt * c * h * w * 4
    filt_bytes = ahT.nbytes + bwT.nbytes
    vmem_limit = int(min(48 << 20, max(32 << 20, 2 * filt_bytes + 6 * block_bytes + (4 << 20))))

    return pl.pallas_call(
        _make_blur_kernel(bt, c, h, w, rank),
        out_shape=jax.ShapeDtypeStruct((n, c, h, w), jnp.float32),
        grid=(n // bt,),
        in_specs=[
            pl.BlockSpec((rank, h, h), lambda i: (0, 0, 0)),
            pl.BlockSpec((rank, w, w), lambda i: (0, 0, 0)),
            pl.BlockSpec((bt, c, h, w), lambda i: (i, 0, 0, 0)),
        ],
        out_specs=pl.BlockSpec((bt, c, h, w), lambda i: (i, 0, 0, 0)),
        compiler_params=pltpu.CompilerParams(
            dimension_semantics=("parallel",),
            vmem_limit_bytes=vmem_limit),
    )(jnp.asarray(ahT), jnp.asarray(bwT), x)


# ----------------------------------------------------------------------------
# Filter builders + low-rank factorizations (numpy glue — static per call).
# ----------------------------------------------------------------------------
def _gaussian_kernel2d(sigma):
    # scipy gaussian_filter truncate=4.0 (no radius cap needed: the banded
    # operator matrices are (H,H)/(W,W) regardless of the filter support).
    radius = int(4.0 * sigma + 0.5)
    t = np.arange(-radius, radius + 1, dtype=np.float64)
    g = np.exp(-0.5 * (t / sigma) ** 2)
    g /= g.sum()
    return np.outer(g, g).astype(np.float32)


def _conv2d_same_np(a, k):
    kh, kw = k.shape
    ph, pw = kh // 2, kw // 2
    ap = np.pad(a, ((ph, ph), (pw, pw)), mode="edge")
    out = np.zeros_like(a)
    for i in range(kh):
        for j in range(kw):
            out += k[i, j] * ap[i:i + a.shape[0], j:j + a.shape[1]]
    return out


def _disk_kernel(radius, alias_blur=0.1):
    if radius <= 8:
        coords = np.arange(-8, 9)
        ksize = 3
    else:
        coords = np.arange(-radius, radius + 1)
        ksize = 5
    xx, yy = np.meshgrid(coords, coords)
    disk = ((xx ** 2 + yy ** 2) <= radius ** 2).astype(np.float64)
    disk /= disk.sum()
    sig = max(alias_blur, 1e-3)
    t = np.arange(-(ksize // 2), ksize // 2 + 1, dtype=np.float64)
    g = np.exp(-0.5 * (t / sig) ** 2)
    g /= g.sum()
    return _conv2d_same_np(disk, np.outer(g, g)).astype(np.float32)


def _motion_kernel(radius, sigma, angle_deg):
    # TODO(synk): library uses ImageMagick MotionBlur; rasterized gaussian-weighted
    # line kernel approximation here.
    ksz = 2 * radius + 1
    k = np.zeros((ksz, ksz), np.float64)
    ang = np.deg2rad(angle_deg)
    for t in np.linspace(-radius, radius, 4 * ksz):
        i = int(round(radius + t * np.sin(ang)))
        j = int(round(radius + t * np.cos(ang)))
        k[i, j] += np.exp(-0.5 * (t / max(sigma, 1e-3)) ** 2)
    k /= k.sum()
    return k.astype(np.float32)


def _svd_factors(kernel2d, rank):
    """Top-`rank` SVD factors of a 2-D filter (gaussian is exactly rank 1)."""
    u_mat, s, vt = np.linalg.svd(kernel2d.astype(np.float64))
    rank = min(rank, s.shape[0])
    us, vs = [], []
    for r in range(rank):
        sc = np.sqrt(max(float(s[r]), 0.0))
        us.append(u_mat[:, r] * sc)
        vs.append(vt[r, :] * sc)
    return us, vs


def _row_factors(kernel2d):
    """Exact rank decomposition by non-zero rows (for thin line/motion kernels)."""
    ksz = kernel2d.shape[0]
    us, vs = [], []
    for p in range(ksz):
        row = kernel2d[p, :]
        if float(np.abs(row).sum()) > 0.0:
            e = np.zeros(ksz)
            e[p] = 1.0
            us.append(e)
            vs.append(row.copy())
    return us, vs


# ----------------------------------------------------------------------------
# `corrupt` dispatcher (analogue of imagecorruptions.corrupt).
# ----------------------------------------------------------------------------
_POINTWISE = {
    "gaussian_noise": (_P_GAUSS, _GAUSS_NOISE_C),
    "shot_noise": (_P_SHOT, _SHOT_NOISE_C),
    "impulse_noise": (_P_IMPULSE, _IMPULSE_NOISE_C),
    "speckle_noise": (_P_SPECKLE, _SPECKLE_NOISE_C),
    "brightness": (_P_BRIGHT, _BRIGHTNESS_C),
    "contrast": (_P_CONTRAST, _CONTRAST_C),
    "saturate": (_P_SATURATE, [c[0] for c in _SATURATE_C]),
}


def corrupt(x, severity, method):
    x = jnp.asarray(x, jnp.float32)
    if severity <= 0:
        # random_forward may draw severity 0 → treat as "no corruption".
        return x
    # Mirrors the library's reliance on the (seeded) global np.random stream.
    seed = int(np.random.randint(0, 2 ** 31 - 1))
    key = jax.random.PRNGKey(seed)

    if method in _POINTWISE:
        mode, table = _POINTWISE[method]
        p0 = table[severity - 1]
        if mode in (_P_CONTRAST, _P_SATURATE):
            return _channel_corrupt(x, mode, p0)
        return _elementwise_corrupt(x, mode, p0, key)

    if method == "gaussian_blur":
        sigma = _GAUSS_BLUR_C[severity - 1]
        us, vs = _svd_factors(_gaussian_kernel2d(sigma), 1)      # exactly rank 1
        return _blur_corrupt(x, us, vs, rank=1)

    if method == "defocus_blur":
        radius, alias = _DEFOCUS_C[severity - 1]
        us, vs = _svd_factors(_disk_kernel(radius, alias), _DEFOCUS_RANK)
        return _blur_corrupt(x, us, vs, rank=_DEFOCUS_RANK)

    if method == "motion_blur":
        radius, sigma = _MOTION_C[severity - 1]
        angle = float(np.random.uniform(-45, 45))
        us, vs = _row_factors(_motion_kernel(radius, sigma, angle))
        # Pad the (exact) rank to a bucket of 8 so random angles don't retrace.
        rank = max(8, _round_up(len(us), 8))
        return _blur_corrupt(x, us, vs, rank=rank)

    # TODO(synk): zoom_blur / snow / frost / fog / pixelate / jpeg_compression /
    # spatter need resampling, fractal noise or a JPEG codec with no clean Pallas
    # equivalent; passed through unchanged.
    return x


# ----------------------------------------------------------------------------
# Module (mirrors the PyTorch ImagenetC control flow).
# ----------------------------------------------------------------------------
_CORRUPTION_NAMES = [
    "gaussian_noise", "shot_noise", "impulse_noise", "defocus_blur", "glass_blur",
    "motion_blur", "zoom_blur", "snow", "frost", "fog", "brightness", "contrast",
    "elastic_transform", "pixelate", "jpeg_compression", "speckle_noise",
    "gaussian_blur", "spatter", "saturate",
]


class ImagenetC:
    methods = [m for m in _CORRUPTION_NAMES if m not in ("elastic_transform", "glass_blur")]

    def __len__(self):
        return len(self.methods)

    def __init__(self, max_sev=2, method_id=None):
        np.random.seed(42)
        random.seed(42)
        self.max_sev = max_sev
        self.random_choice = method_id is None
        self.method_id = method_id

    def __call__(self, x):
        return self.forward(x)

    def forward(self, x):
        if self.random_choice:
            return self.random_forward(x)
        else:
            return self.method_forward(x)

    def random_forward(self, x):
        method = random.choice(self.methods)
        severity = random.randint(0, self.max_sev)
        x = jnp.asarray(x)
        if random.random() > 0.5:
            x = corrupt(x, severity, method)
        return x

    def method_forward(self, x):
        method = self.methods[self.method_id]
        severity = random.randint(1, self.max_sev)
        x = jnp.asarray(x)
        x = corrupt(x, severity, method)
        return x


# ----------------------------------------------------------------------------
# Demo / smoke test.
# ----------------------------------------------------------------------------
if __name__ == "__main__":
    key = jax.random.PRNGKey(0)
    # NCHW, float32 image batch in [0, 1]: batch=2, channels=3 (RGB), 16x16.
    x = jax.random.uniform(key, (2, 3, 16, 16), dtype=jnp.float32)

    # Exercise all three Pallas kernels via fixed method ids:
    #  0: gaussian_noise, 2: impulse_noise, 3: defocus_blur, 4: motion_blur,
    # 10: contrast, 14: gaussian_blur, 16: saturate.
    for mid in (0, 2, 3, 4, 10, 14, 16):
        mod = ImagenetC(max_sev=2, method_id=mid)
        y = mod(x)
        y = jax.block_until_ready(y)
        assert y.shape == x.shape and y.dtype == jnp.float32
        assert bool(jnp.all(jnp.isfinite(y)))
        assert bool(jnp.all(y >= 0.0)) and bool(jnp.all(y <= 1.0))

    # Random-choice path (mirrors random_forward semantics).
    mod = ImagenetC(max_sev=2)
    y = mod(x)
    y = jax.block_until_ready(jnp.asarray(y))
    assert y.shape == x.shape

    print("KERNEL_OK")
</pallas_src>

<mosaic_0001>
module attributes {stable_mosaic.version = 11 : i64} {
  func.func @kernel(%arg0: i32, %arg1: memref<1x1xf32, #tpu.memory_space<vmem>>, %arg2: memref<3x512xf32, #tpu.memory_space<vmem>>, %arg3: memref<3x512xf32, #tpu.memory_space<vmem>>, %arg4: memref<3x512xf32, #tpu.memory_space<vmem>>) attributes {dimension_semantics = [#tpu.dimension_semantics<parallel>], iteration_bounds = array<i64: 1>, scalar_prefetch = 0 : i64, scratch_operands = 0 : i64, tpu.core_type = #tpu.core_type<tc>, window_params = [{pipeline_mode = #tpu.pipeline_mode<synchronous>, transform_indices = @transform_0, window_bounds = array<i64: 1, 1>}, {transform_indices = @transform_1, window_bounds = array<i64: 3, 512>}, {transform_indices = @transform_2, window_bounds = array<i64: 3, 512>}, {transform_indices = @transform_3, window_bounds = array<i64: 3, 512>}]} {
    %c0 = arith.constant 0 : index
    %c0_0 = arith.constant 0 : index
    %0 = vector.load %arg1[%c0, %c0_0] : memref<1x1xf32, #tpu.memory_space<vmem>>, vector<1x1xf32>
    %c0_1 = arith.constant 0 : index
    %c0_2 = arith.constant 0 : index
    %1 = vector.load %arg2[%c0_1, %c0_2] : memref<3x512xf32, #tpu.memory_space<vmem>>, vector<3x512xf32>
    %c0_3 = arith.constant 0 : index
    %c0_4 = arith.constant 0 : index
    %2 = vector.load %arg3[%c0_3, %c0_4] : memref<3x512xf32, #tpu.memory_space<vmem>>, vector<3x512xf32>
    %3 = vector.broadcast %0 : vector<1x1xf32> to vector<3x512xf32>
    %4 = arith.mulf %3, %2 : vector<3x512xf32>
    %5 = arith.addf %1, %4 : vector<3x512xf32>
    %cst = arith.constant 0.000000e+00 : f32
    %cst_5 = arith.constant 1.000000e+00 : f32
    %6 = vector.broadcast %cst : f32 to vector<3x512xf32>
    %7 = arith.maximumf %6, %5 : vector<3x512xf32>
    %8 = vector.broadcast %cst_5 : f32 to vector<3x512xf32>
    %9 = arith.minimumf %8, %7 : vector<3x512xf32>
    %c0_6 = arith.constant 0 : index
    %c0_7 = arith.constant 0 : index
    %10 = vector.load %arg4[%c0_6, %c0_7] : memref<3x512xf32, #tpu.memory_space<vmem>>, vector<3x512xf32>
    tpu.vector_store %arg4[%c0_6, %c0_7], %9 {strides = array<i32>} : memref<3x512xf32, #tpu.memory_space<vmem>>, vector<3x512xf32>,
    return
  }
  func.func @transform_0(%arg0: i32) -> (i32, i32) {
    %c0_i32 = arith.constant 0 : i32
    %c0_i32_0 = arith.constant 0 : i32
    %c0_i32_1 = arith.constant 0 : i32
    return %c0_i32, %c0_i32_0 : i32, i32
  }
  func.func @transform_1(%arg0: i32) -> (i32, i32) {
    %c0_i32 = arith.constant 0 : i32
    %c0_i32_0 = arith.constant 0 : i32
    return %arg0, %c0_i32 : i32, i32
  }
  func.func @transform_2(%arg0: i32) -> (i32, i32) {
    %c0_i32 = arith.constant 0 : i32
    %c0_i32_0 = arith.constant 0 : i32
    return %arg0, %c0_i32 : i32, i32
  }
  func.func @transform_3(%arg0: i32) -> (i32, i32) {
    %c0_i32 = arith.constant 0 : i32
    %c0_i32_0 = arith.constant 0 : i32
    return %arg0, %c0_i32 : i32, i32
  }
}

</mosaic_0001>

<bundles_post_ra>
// kernel: tpu_custom_call.1
= control target key start
LH: loop header
LB: loop body
LE: loop exit
PB: predicated region body
PF: predicated region fallthrough
CT: control target
= control target key end

     0   :  { %s204_s0 = inlined_call_operand.<no memory space> [shape: f32[1,1], index: 0, kind: input, shape index: {}]   ;;  %s205_s1 = inlined_call_operand.hbm [shape: f32[3,512], index: 1, kind: input, shape index: {}]   ;;  %s206_s2 = inlined_call_operand.hbm [shape: f32[3,512], index: 2, kind: input, shape index: {}]   ;;  %s207_s3 = inlined_call_operand.hbm [shape: f32[3,512], index: 3, kind: output, shape index: {}]  }
   0x1   :  { %v8_v0 = vstv %s204_s0 }
   0x2   :  { %9 = vst [vmem:[#allocation2] sm:$0x1] %v8_v0 }
   0x3   :  { %10 = vsyncpa [#allocation4], 0 }
   0x4   :  { %11 = vsyncpa [#allocation7], 0 }
   0x5   :  { %12 = vsyncpa [#allocation5], 0  ;;  %s20_s16 = sshll.u32 %s205_s1, 4  ;;  %s168_s17 = smov [#allocation3]   ;;  %s21_s16 = int_to_ptr.hbm [resolvable:$true] %s20_s16 }
   0x6   :  { %s22_s18 = sshll.u32 %s168_s17, 4  ;;  %s31_s21 = sshll.u32 %s206_s2, 4  ;;  %s23_s18 = int_to_ptr.vmem [resolvable:$true] %s22_s18  ;;  %s32_s21 = int_to_ptr.hbm [resolvable:$true] %s31_s21 }
   0x7   :  { %25 = dma.hbm_to_vmem [thread:$0]  %s21_s16, 256, %s23_s18, [#allocation4]  }
   0x8   :  { %s169_s22 = smov [#allocation6]  }
   0x9   :  { %s33_s0 = sshll.u32 %s169_s22, 4  ;;  %s34_s0 = int_to_ptr.vmem [resolvable:$true] %s33_s0 }
   0xa   :  { %36 = dma.hbm_to_vmem [thread:$0]  %s32_s21, 256, %s34_s0, [#allocation7]  }
   0xb   :  { %162 = dma.done.wait [#allocation4], 256  }
   0xc   :  { %163 = vsyncadd [#allocation4], 4294967040 }
   0xd   :  { %164 = dma.done.wait [#allocation7], 256  }
   0xe   :  { %165 = vsyncadd [#allocation7], 4294967040  ;;  %v170_v1 = vmov 0   ;;  %v89_v2 = vld [vmem:[#allocation2] ss:$0 sm:$0xff]  ;;  %s171_s1 = smov [#allocation8]  }
   0xf   :  { %88 = vset.pattern.permute.xlu0 %v170_v1  ;;  %v48_v3 = vld [vmem:[#allocation6] sm:$0x77]  ;;  %v49_v4 = vld [vmem:[#allocation6 + $0x8] sm:$0x77]  ;;  %v46_v5 = vld [vmem:[#allocation3] sm:$0x77] }
  0x10   :  { %53 = vperm.xlu0 %88, %v89_v2   ;;  %v47_v6 = vld [vmem:[#allocation3 + $0x8] sm:$0x77]  ;;  %s71_s2 = sshll.u32 %s171_s1, 4  ;;  %s73_s25 = sshll.u32 %s207_s3, 4  ;;  %s72_s2 = int_to_ptr.vmem [resolvable:$true] %s71_s2  ;;  %s74_s25 = int_to_ptr.hbm [resolvable:$true] %s73_s25 }
  0x82   :  { %v54_v7 = vpop.permute.xlu0 %53 }
  0x83   :  { %v56_v8 = vmul.f32 %v54_v7, %v48_v3  ;;  %v57_v9 = vmul.f32 %v54_v7, %v49_v4 }
  0x85   :  { %v58_v10 = vadd.f32 %v56_v8, %v46_v5  ;;  %v59_v11 = vadd.f32 %v57_v9, %v47_v6 }
  0x87   :  { %v60_v12 = vmax.f32 %v58_v10, 0.0  ;;  %v61_v13 = vmax.f32 %v59_v11, 0.0 }
  0x89   :  { %v62_v14 = vmin.f32 %v60_v12, 1.0  ;;  %v63_v15 = vmin.f32 %v61_v13, 1.0 }
  0x8b   :  { %64 = vst [vmem:[#allocation8] sm:$0x77] %v62_v14 }
  0x8c   :  { %65 = vst [vmem:[#allocation8 + $0x8] sm:$0x77] %v63_v15 }
  0x8d   :  { %76 = dma.vmem_to_hbm [thread:$0]  %s72_s2, 256, %s74_s25, [#allocation5]  }
  0x8e   :  { %166 = dma.done.wait [#allocation5], 256  }
  0x8f   :  { %167 = vsyncadd [#allocation5], 4294967040 }
  0x90   :  { %81 = vsyncpa [#allocation4], 1 }
  0x91   :  { %82 = vsyncpa [#allocation7], 1 }
  0x92   :  { %83 = vsyncpa [#allocation5], 1 }

</bundles_post_ra>
